<compile_context>
chip_gen: v6e
topology: v6e:2x2x1
jax: 0.10.0
libtpu: 0.0.40
codegen_flags: <defaults>
</compile_context>

<pallas_src>
import jax
import jax.numpy as jnp
from jax.experimental import pallas as pl
from jax.experimental.pallas import tpu as pltpu

BN_EPS = 1e-5
LANE = 128
MIB = 1024 * 1024


def _round_up(x, m):
    return ((x + m - 1) // m) * m


def _pick_div(target, n):
    """Largest tile <= target that divides n (n is a multiple of 128)."""
    t = min(target, n)
    while n % t != 0:
        t //= 2
    return t


def _device_config():
    """Per-TPU-generation gate dtype, tile sizes and VMEM budget."""
    kind = jax.devices()[0].device_kind.lower()
    if "v7" in kind or "7x" in kind:
        # 64 MiB VMEM / TensorCore -> leave headroom; bf16 EUP/VPU native.
        cfg = {"gate_dtype": jnp.bfloat16, "tile": 256, "chunk": 256,
               "vmem": 56 * MIB}
    elif "v6" in kind:
        # 128 MiB VMEM; 256x256 MXU; bf16 EUP/VPU native.
        cfg = {"gate_dtype": jnp.bfloat16, "tile": 256, "chunk": 512,
               "vmem": 100 * MIB}
    elif "v5 lite" in kind or "v5e" in kind or "v5lite" in kind:
        # v5e VPU/EUP have no bf16 path -> keep all elementwise math in f32.
        cfg = {"gate_dtype": jnp.float32, "tile": 128, "chunk": 512,
               "vmem": 100 * MIB}
    else:  # v5p / v4 / unknown: conservative f32 + modest VMEM budget.
        cfg = {"gate_dtype": jnp.float32, "tile": 128, "chunk": 256,
               "vmem": 48 * MIB}
    try:  # never ask for more than (physical VMEM - headroom) on this part
        cap = pltpu.get_tpu_info().vmem_capacity_bytes
        cfg["vmem"] = min(cfg["vmem"], max(cap - 8 * MIB, 16 * MIB))
    except Exception:
        pass
    return cfg


# --------------------------------------------------------------------------- #
# Kernel 1: BN affine + q/k/v projections, tiled over node rows.
# (wq / bq / wk arrive pre-scaled by 0.5 — see sgat_forward.)
# --------------------------------------------------------------------------- #
def _make_proj_kernel(n_valid, tile_rows):
    def proj_kernel(feat_ref, scale_ref, shift_ref, wq_ref, bq_ref, wk_ref,
                    wv_ref, q_ref, k_ref, v_ref):
        i = pl.program_id(0)
        x = feat_ref[...]                                     # (TP, D_in) f32
        xn = x * scale_ref[...] + shift_ref[...]              # BN affine
        # Zero padded rows (>= n_valid) so no garbage leaks downstream.
        row = (jax.lax.broadcasted_iota(jnp.int32, (tile_rows, 1), 0)
               + i * tile_rows)
        valid = (row < n_valid).astype(jnp.float32)           # (TP, 1)
        q = (jnp.dot(xn, wq_ref[...], preferred_element_type=jnp.float32)
             + bq_ref[...]) * valid
        k = jnp.dot(xn, wk_ref[...], preferred_element_type=jnp.float32) * valid
        v = jnp.dot(xn, wv_ref[...], preferred_element_type=jnp.float32) * valid
        q_ref[...] = q.astype(q_ref.dtype)
        k_ref[...] = k.astype(k_ref.dtype)
        v_ref[...] = v.astype(v_ref.dtype)
    return proj_kernel


# --------------------------------------------------------------------------- #
# Kernel 2: per-edge gate + online edge_softmax + aggregation.
# grid = (dst tiles [parallel], src chunks [arbitrary, reduction]).
# --------------------------------------------------------------------------- #
def attn_kernel(k_ref, qT_ref, v_ref, we_ref, adj_ref, out_ref,
                m_sc, l_sc, acc_sc):
    j = pl.program_id(1)

    @pl.when(j == 0)
    def _init():
        m_sc[...] = jnp.full(m_sc.shape, -1e30, jnp.float32)
        l_sc[...] = jnp.zeros(l_sc.shape, jnp.float32)
        acc_sc[...] = jnp.zeros(acc_sc.shape, jnp.float32)

    kt = k_ref[...]                              # (TILE, H)    0.5*k, gate dt
    qT = qT_ref[...]                             # (H, CHUNK)   0.5*q, gate dt
    adjf = adj_ref[...].astype(jnp.float32)      # (TILE,CHUNK) {0,1}, int8 DMA

    # Per-edge gate (fn.u_add_v + th.sigmoid + attn_e): src chunk on lanes,
    # only the real H on sublanes.  sigmoid(q+k) = 0.5*(1 + tanh((q+k)/2));
    # the 1/2 factors are folded into the projection weights and w_e in the
    # wrapper and the global constant 0.5*sum(w_e) shifts every score equally,
    # so it cancels in edge_softmax and is omitted.  tanh is one EUP op.
    g = jnp.tanh(kt[:, :, None] + qT[None, :, :])             # (TILE,H,CHUNK)
    s = jnp.sum(g.astype(jnp.float32) * we_ref[...], axis=1)  # (TILE,CHUNK) f32

    # Online edge_softmax over incoming edges of each destination row.
    neg = jnp.float32(-1e30)
    m_prev = m_sc[...]
    m_new = jnp.maximum(m_prev, jnp.max(jnp.where(adjf > 0.0, s, neg),
                                        axis=-1, keepdims=True))   # (TILE, 1)
    alpha = jnp.exp(m_prev - m_new)
    # min(., 0) keeps exp bounded for non-edges whose raw score exceeds m_new.
    p = jnp.exp(jnp.minimum(s - m_new, 0.0)) * adjf                # (TILE,CHUNK)
    m_sc[...] = m_new
    l_sc[...] = alpha * l_sc[...] + jnp.sum(p, axis=-1, keepdims=True)
    # update_all(u_mul_e('v','a'), sum): bf16 MXU matmul, f32 accumulation.
    acc_sc[...] = alpha * acc_sc[...] + jnp.dot(
        p.astype(v_ref.dtype), v_ref[...], preferred_element_type=jnp.float32)

    @pl.when(j == pl.num_programs(1) - 1)
    def _finalize():
        inv = pl.reciprocal(jnp.maximum(l_sc[...], 1e-20), approx=True)  # EUP
        out_ref[...] = acc_sc[...] * inv
        # activation is None in this configuration; it would be applied here.


# --------------------------------------------------------------------------- #
# Wrapper
# --------------------------------------------------------------------------- #
def sgat_forward(feat, adj, params, *, config=None):
    N, d_in = feat.shape
    H = params["wq"].shape[1]
    O = params["wv"].shape[1]

    cfg = dict(_device_config())
    if config:
        cfg.update(config)
    gate_dtype = cfg["gate_dtype"]

    n_pad = _round_up(max(N, 1), LANE)        # lane-dense src/dst extent
    tile = _pick_div(cfg["tile"], n_pad)      # dst rows per grid step
    chunk = _pick_div(cfg["chunk"], n_pad)    # src cols per grid step
    hs = _round_up(H, 8)                      # sublane-aligned real hidden dim
    op = _round_up(O, LANE)                   # lane-dense output dim

    f32 = jnp.float32

    def pad2(a, r, c, dtype=f32):
        out = jnp.zeros((r, c), dtype)
        return out.at[:a.shape[0], :a.shape[1]].set(a.astype(dtype))

    # ---- BN batch statistics (two-pass, numerically stable) in wrapper XLA.
    xf = feat.astype(f32)
    mean = jnp.mean(xf, axis=0, keepdims=True)
    var = jnp.mean((xf - mean) ** 2, axis=0, keepdims=True)   # biased, as torch
    scale = params["gamma"].reshape(1, -1).astype(f32) * jax.lax.rsqrt(var + BN_EPS)
    shift = params["beta"].reshape(1, -1).astype(f32) - mean * scale

    feat_p = pad2(feat, n_pad, d_in)
    # adj as int8: 4x less HBM/DMA than f32 for the dominant N^2 term.
    adj_i8 = pad2((adj > 0).astype(jnp.int8), n_pad, n_pad, jnp.int8)

    # sigmoid(z) = 0.5*(1+tanh(z/2)): fold the 1/2 into q/k projections and w_e
    # so the attention kernel only runs a bare tanh per edge element.
    wq = pad2(params["wq"] * 0.5, d_in, hs)
    bq = pad2(params["bq"] * 0.5, 1, hs)
    wk = pad2(params["wk"] * 0.5, d_in, hs)
    wv = pad2(params["wv"], d_in, op)
    we = pad2(params["we"] * 0.5, 1, hs).reshape(1, hs, 1)    # (1, H, 1) f32

    compiler_params_1d = pltpu.CompilerParams(
        dimension_semantics=("parallel",),
        vmem_limit_bytes=cfg["vmem"])

    # ---- kernel 1: BN affine + q/k/v projections, tiled over node rows ----
    q, k, v = pl.pallas_call(
        _make_proj_kernel(N, tile),
        out_shape=(jax.ShapeDtypeStruct((n_pad, hs), gate_dtype),
                   jax.ShapeDtypeStruct((n_pad, hs), gate_dtype),
                   jax.ShapeDtypeStruct((n_pad, op), jnp.bfloat16)),
        grid_spec=pltpu.PrefetchScalarGridSpec(
            num_scalar_prefetch=0,
            grid=(n_pad // tile,),
            in_specs=[
                pl.BlockSpec((tile, d_in), lambda i: (i, 0)),   # feat
                pl.BlockSpec((1, d_in), lambda i: (0, 0)),      # BN scale
                pl.BlockSpec((1, d_in), lambda i: (0, 0)),      # BN shift
                pl.BlockSpec((d_in, hs), lambda i: (0, 0)),     # wq (pre-scaled)
                pl.BlockSpec((1, hs), lambda i: (0, 0)),        # bq (pre-scaled)
                pl.BlockSpec((d_in, hs), lambda i: (0, 0)),     # wk (pre-scaled)
                pl.BlockSpec((d_in, op), lambda i: (0, 0)),     # wv
            ],
            out_specs=(pl.BlockSpec((tile, hs), lambda i: (i, 0)),
                       pl.BlockSpec((tile, hs), lambda i: (i, 0)),
                       pl.BlockSpec((tile, op), lambda i: (i, 0))),
        ),
        compiler_params=compiler_params_1d,
    )(feat_p, scale, shift, wq, bq, wk, wv)

    # q transposed (H on sublanes, src nodes on lanes) for the gate kernel.
    # Tiny one-off XLA transpose keeps the hot kernel free of relayouts.
    qT = q.T

    # ---- kernel 2: per-edge gate + online edge_softmax + aggregation ------
    n_dst_tiles = n_pad // tile
    n_src_chunks = n_pad // chunk
    gate_bytes = jnp.dtype(gate_dtype).itemsize
    flops = n_pad * n_pad * (3 * hs + 2 * op + 8)
    transcendentals = n_pad * n_pad * (hs + 1)
    bytes_accessed = (n_pad * n_pad                              # adj (int8)
                      + n_dst_tiles * n_pad * hs * gate_bytes    # qT re-fetch
                      + n_dst_tiles * n_pad * op * 2             # v  re-fetch
                      + n_pad * hs * gate_bytes                  # k
                      + n_pad * op * 4)                          # out (f32)

    out_p = pl.pallas_call(
        attn_kernel,
        out_shape=jax.ShapeDtypeStruct((n_pad, op), f32),
        grid_spec=pltpu.PrefetchScalarGridSpec(
            num_scalar_prefetch=0,
            grid=(n_dst_tiles, n_src_chunks),      # src (reduction) axis last
            in_specs=[
                pl.BlockSpec((tile, hs), lambda i, j: (i, 0)),     # k (dst tile)
                pl.BlockSpec((hs, chunk), lambda i, j: (0, j)),    # q^T (src chunk)
                pl.BlockSpec((chunk, op), lambda i, j: (j, 0)),    # v (src chunk)
                pl.BlockSpec((1, hs, 1), lambda i, j: (0, 0, 0)),  # w_e (resident)
                pl.BlockSpec((tile, chunk), lambda i, j: (i, j)),  # adj (int8)
            ],
            out_specs=pl.BlockSpec((tile, op), lambda i, j: (i, 0)),
            scratch_shapes=[pltpu.VMEM((tile, 1), f32),    # running max
                            pltpu.VMEM((tile, 1), f32),    # running denom
                            pltpu.VMEM((tile, op), f32)],  # f32 accumulator
        ),
        compiler_params=pltpu.CompilerParams(
            dimension_semantics=("parallel", "arbitrary"),
            vmem_limit_bytes=cfg["vmem"]),
        cost_estimate=pl.CostEstimate(
            flops=int(flops),
            transcendentals=int(transcendentals),
            bytes_accessed=int(bytes_accessed)),
    )(k, qT, v, we, adj_i8)

    return out_p[:N, :O]


# --------------------------------------------------------------------------- #
# Params / reference / demo
# --------------------------------------------------------------------------- #
def init_params(key, input_dim, hidden_dim, output_dim):
    """Deterministic synthetic init (PyTorch-Linear-style uniform scaling)."""
    ks = jax.random.split(key, 5)

    def lin(k, fan_in, fan_out):
        bound = 1.0 / (fan_in ** 0.5)
        return jax.random.uniform(k, (fan_in, fan_out), jnp.float32, -bound, bound)

    return {
        "gamma": jnp.ones((1, input_dim), jnp.float32),
        "beta": jnp.zeros((1, input_dim), jnp.float32),
        "wq": lin(ks[0], input_dim, hidden_dim),
        "bq": jax.random.uniform(ks[1], (1, hidden_dim), jnp.float32,
                                 -1.0 / (input_dim ** 0.5), 1.0 / (input_dim ** 0.5)),
        "wk": lin(ks[2], input_dim, hidden_dim),
        "wv": lin(ks[3], input_dim, output_dim),
        "we": lin(ks[4], hidden_dim, 1).T,   # (1, hidden)
    }


def sgat_reference(feat, adj, params):
    """Pure-JAX fp32 reference of the same forward pass."""
    x = feat.astype(jnp.float32)
    mean = x.mean(0, keepdims=True)
    var = ((x - mean) ** 2).mean(0, keepdims=True)
    x = (x - mean) * jax.lax.rsqrt(var + BN_EPS) * params["gamma"] + params["beta"]
    q = x @ params["wq"] + params["bq"]
    k = x @ params["wk"]
    v = x @ params["wv"]
    e = jax.nn.sigmoid(q[None, :, :] + k[:, None, :])        # (dst, src, H)
    s = jnp.einsum("jih,h->ji", e, params["we"][0])
    sm = jnp.where(adj > 0, s, jnp.float32(-1e30))
    m = sm.max(-1, keepdims=True)
    p = jnp.where(adj > 0, jnp.exp(s - m), 0.0)
    a = p / jnp.maximum(p.sum(-1, keepdims=True), 1e-20)
    return a @ v


if __name__ == "__main__":
    # Small, deliberately non-tile-aligned N to exercise the padding path.
    N, INPUT_DIM, HIDDEN_DIM, OUTPUT_DIM = 60, 16, 32, 32

    key = jax.random.PRNGKey(0)
    k_feat, k_adj, k_par = jax.random.split(key, 3)

    feat = jax.random.normal(k_feat, (N, INPUT_DIM), jnp.float32)
    # random sparse directed graph; self-loops so every node has an in-edge
    adj = jax.random.bernoulli(k_adj, 0.4, (N, N)).astype(jnp.float32)
    adj = jnp.maximum(adj, jnp.eye(N, dtype=jnp.float32))      # adj[dst, src]

    params = init_params(k_par, INPUT_DIM, HIDDEN_DIM, OUTPUT_DIM)

    out = sgat_forward(feat, adj, params)
    jax.block_until_ready(out)

    assert out.shape == (N, OUTPUT_DIM)
    assert bool(jnp.all(jnp.isfinite(out)))

    ref = sgat_reference(feat, adj, params)
    # bf16 gate/aggregation + approx reciprocal -> loose tolerance vs f32 ref
    assert bool(jnp.allclose(out, ref, rtol=5e-2, atol=5e-2))

    print("KERNEL_OK")
</pallas_src>

<mosaic_0001>
module attributes {stable_mosaic.version = 11 : i64} {
  func.func @proj_kernel(%arg0: i32, %arg1: memref<128x16xf32, #tpu.memory_space<vmem>>, %arg2: memref<1x16xf32, #tpu.memory_space<vmem>>, %arg3: memref<1x16xf32, #tpu.memory_space<vmem>>, %arg4: memref<16x32xf32, #tpu.memory_space<vmem>>, %arg5: memref<1x32xf32, #tpu.memory_space<vmem>>, %arg6: memref<16x32xf32, #tpu.memory_space<vmem>>, %arg7: memref<16x128xf32, #tpu.memory_space<vmem>>, %arg8: memref<128x32xf32, #tpu.memory_space<vmem>>, %arg9: memref<128x32xf32, #tpu.memory_space<vmem>>, %arg10: memref<128x128xbf16, #tpu.memory_space<vmem>>) attributes {dimension_semantics = [#tpu.dimension_semantics<parallel>], iteration_bounds = array<i64: 1>, scalar_prefetch = 0 : i64, scratch_operands = 0 : i64, tpu.core_type = #tpu.core_type<tc>, window_params = [{transform_indices = @transform_0, window_bounds = array<i64: 128, 16>}, {pipeline_mode = #tpu.pipeline_mode<synchronous>, transform_indices = @transform_1, window_bounds = array<i64: 1, 16>}, {pipeline_mode = #tpu.pipeline_mode<synchronous>, transform_indices = @transform_2, window_bounds = array<i64: 1, 16>}, {pipeline_mode = #tpu.pipeline_mode<synchronous>, transform_indices = @transform_3, window_bounds = array<i64: 16, 32>}, {pipeline_mode = #tpu.pipeline_mode<synchronous>, transform_indices = @transform_4, window_bounds = array<i64: 1, 32>}, {pipeline_mode = #tpu.pipeline_mode<synchronous>, transform_indices = @transform_5, window_bounds = array<i64: 16, 32>}, {pipeline_mode = #tpu.pipeline_mode<synchronous>, transform_indices = @transform_6, window_bounds = array<i64: 16, 128>}, {transform_indices = @transform_7, window_bounds = array<i64: 128, 32>}, {transform_indices = @transform_8, window_bounds = array<i64: 128, 32>}, {transform_indices = @transform_9, window_bounds = array<i64: 128, 128>}]} {
    %c0 = arith.constant 0 : index
    %c0_0 = arith.constant 0 : index
    %0 = vector.load %arg1[%c0, %c0_0] : memref<128x16xf32, #tpu.memory_space<vmem>>, vector<128x16xf32>
    %c0_1 = arith.constant 0 : index
    %c0_2 = arith.constant 0 : index
    %1 = vector.load %arg2[%c0_1, %c0_2] : memref<1x16xf32, #tpu.memory_space<vmem>>, vector<1x16xf32>
    %2 = vector.broadcast %1 : vector<1x16xf32> to vector<128x16xf32>
    %3 = arith.mulf %0, %2 : vector<128x16xf32>
    %c0_3 = arith.constant 0 : index
    %c0_4 = arith.constant 0 : index
    %4 = vector.load %arg3[%c0_3, %c0_4] : memref<1x16xf32, #tpu.memory_space<vmem>>, vector<1x16xf32>
    %5 = vector.broadcast %4 : vector<1x16xf32> to vector<128x16xf32>
    %6 = arith.addf %3, %5 : vector<128x16xf32>
    %7 = tpu.iota {dimensions = array<i32: 0>} : vector<128x1xi32>
    %c128_i32 = arith.constant 128 : i32
    %8 = arith.muli %arg0, %c128_i32 : i32
    %9 = vector.broadcast %8 : i32 to vector<128x1xi32>
    %10 = arith.addi %7, %9 : vector<128x1xi32>
    %c60_i32 = arith.constant 60 : i32
    %11 = vector.broadcast %c60_i32 : i32 to vector<128x1xi32>
    %12 = arith.cmpi slt, %10, %11 : vector<128x1xi32>
    %13 = arith.extui %12 : vector<128x1xi1> to vector<128x1xi32>
    %14 = arith.sitofp %13 : vector<128x1xi32> to vector<128x1xf32>
    %c0_5 = arith.constant 0 : index
    %c0_6 = arith.constant 0 : index
    %15 = vector.load %arg4[%c0_5, %c0_6] : memref<16x32xf32, #tpu.memory_space<vmem>>, vector<16x32xf32>
    %cst = arith.constant dense<0.000000e+00> : vector<128x32xf32>
    %16 = tpu.matmul %6, %15, %cst {dimension_numbers = #tpu.dot_dimension_numbers<[1], [0], [0], [1], [0, 0, 1, 1], [], []>} : vector<128x16xf32>, vector<16x32xf32>, vector<128x32xf32> -> vector<128x32xf32>
    %c0_7 = arith.constant 0 : index
    %c0_8 = arith.constant 0 : index
    %17 = vector.load %arg5[%c0_7, %c0_8] : memref<1x32xf32, #tpu.memory_space<vmem>>, vector<1x32xf32>
    %18 = vector.broadcast %17 : vector<1x32xf32> to vector<128x32xf32>
    %19 = arith.addf %16, %18 : vector<128x32xf32>
    %20 = vector.broadcast %14 : vector<128x1xf32> to vector<128x32xf32>
    %21 = arith.mulf %19, %20 : vector<128x32xf32>
    %c0_9 = arith.constant 0 : index
    %c0_10 = arith.constant 0 : index
    %22 = vector.load %arg6[%c0_9, %c0_10] : memref<16x32xf32, #tpu.memory_space<vmem>>, vector<16x32xf32>
    %cst_11 = arith.constant dense<0.000000e+00> : vector<128x32xf32>
    %23 = tpu.matmul %6, %22, %cst_11 {dimension_numbers = #tpu.dot_dimension_numbers<[1], [0], [0], [1], [0, 0, 1, 1], [], []>} : vector<128x16xf32>, vector<16x32xf32>, vector<128x32xf32> -> vector<128x32xf32>
    %24 = vector.broadcast %14 : vector<128x1xf32> to vector<128x32xf32>
    %25 = arith.mulf %23, %24 : vector<128x32xf32>
    %c0_12 = arith.constant 0 : index
    %c0_13 = arith.constant 0 : index
    %26 = vector.load %arg7[%c0_12, %c0_13] : memref<16x128xf32, #tpu.memory_space<vmem>>, vector<16x128xf32>
    %cst_14 = arith.constant dense<0.000000e+00> : vector<128x128xf32>
    %27 = tpu.matmul %6, %26, %cst_14 {dimension_numbers = #tpu.dot_dimension_numbers<[1], [0], [0], [1], [0, 0, 1, 1], [], []>} : vector<128x16xf32>, vector<16x128xf32>, vector<128x128xf32> -> vector<128x128xf32>
    %28 = vector.broadcast %14 : vector<128x1xf32> to vector<128x128xf32>
    %29 = arith.mulf %27, %28 : vector<128x128xf32>
    %c0_15 = arith.constant 0 : index
    %c0_16 = arith.constant 0 : index
    %30 = vector.load %arg8[%c0_15, %c0_16] : memref<128x32xf32, #tpu.memory_space<vmem>>, vector<128x32xf32>
    tpu.vector_store %arg8[%c0_15, %c0_16], %21 {strides = array<i32>} : memref<128x32xf32, #tpu.memory_space<vmem>>, vector<128x32xf32>,
    %c0_17 = arith.constant 0 : index
    %c0_18 = arith.constant 0 : index
    %31 = vector.load %arg9[%c0_17, %c0_18] : memref<128x32xf32, #tpu.memory_space<vmem>>, vector<128x32xf32>
    tpu.vector_store %arg9[%c0_17, %c0_18], %25 {strides = array<i32>} : memref<128x32xf32, #tpu.memory_space<vmem>>, vector<128x32xf32>,
    %32 = arith.truncf %29 : vector<128x128xf32> to vector<128x128xbf16>
    %c0_19 = arith.constant 0 : index
    %c0_20 = arith.constant 0 : index
    %33 = vector.load %arg10[%c0_19, %c0_20] : memref<128x128xbf16, #tpu.memory_space<vmem>>, vector<128x128xbf16>
    tpu.vector_store %arg10[%c0_19, %c0_20], %32 {strides = array<i32>} : memref<128x128xbf16, #tpu.memory_space<vmem>>, vector<128x128xbf16>,
    return
  }
  func.func @transform_0(%arg0: i32) -> (i32, i32) {
    %c0_i32 = arith.constant 0 : i32
    %c0_i32_0 = arith.constant 0 : i32
    return %arg0, %c0_i32 : i32, i32
  }
  func.func @transform_1(%arg0: i32) -> (i32, i32) {
    %c0_i32 = arith.constant 0 : i32
    %c0_i32_0 = arith.constant 0 : i32
    %c0_i32_1 = arith.constant 0 : i32
    return %c0_i32, %c0_i32_0 : i32, i32
  }
  func.func @transform_2(%arg0: i32) -> (i32, i32) {
    %c0_i32 = arith.constant 0 : i32
    %c0_i32_0 = arith.constant 0 : i32
    %c0_i32_1 = arith.constant 0 : i32
    return %c0_i32, %c0_i32_0 : i32, i32
  }
  func.func @transform_3(%arg0: i32) -> (i32, i32) {
    %c0_i32 = arith.constant 0 : i32
    %c0_i32_0 = arith.constant 0 : i32
    %c0_i32_1 = arith.constant 0 : i32
    return %c0_i32, %c0_i32_0 : i32, i32
  }
  func.func @transform_4(%arg0: i32) -> (i32, i32) {
    %c0_i32 = arith.constant 0 : i32
    %c0_i32_0 = arith.constant 0 : i32
    %c0_i32_1 = arith.constant 0 : i32
    return %c0_i32, %c0_i32_0 : i32, i32
  }
  func.func @transform_5(%arg0: i32) -> (i32, i32) {
    %c0_i32 = arith.constant 0 : i32
    %c0_i32_0 = arith.constant 0 : i32
    %c0_i32_1 = arith.constant 0 : i32
    return %c0_i32, %c0_i32_0 : i32, i32
  }
  func.func @transform_6(%arg0: i32) -> (i32, i32) {
    %c0_i32 = arith.constant 0 : i32
    %c0_i32_0 = arith.constant 0 : i32
    %c0_i32_1 = arith.constant 0 : i32
    return %c0_i32, %c0_i32_0 : i32, i32
  }
  func.func @transform_7(%arg0: i32) -> (i32, i32) {
    %c0_i32 = arith.constant 0 : i32
    %c0_i32_0 = arith.constant 0 : i32
    return %arg0, %c0_i32 : i32, i32
  }
  func.func @transform_8(%arg0: i32) -> (i32, i32) {
    %c0_i32 = arith.constant 0 : i32
    %c0_i32_0 = arith.constant 0 : i32
    return %arg0, %c0_i32 : i32, i32
  }
  func.func @transform_9(%arg0: i32) -> (i32, i32) {
    %c0_i32 = arith.constant 0 : i32
    %c0_i32_0 = arith.constant 0 : i32
    return %arg0, %c0_i32 : i32, i32
  }
}

</mosaic_0001>

<bundles_post_ra>
// kernel: tpu_custom_call.1
= control target key start
LH: loop header
LB: loop body
LE: loop exit
PB: predicated region body
PF: predicated region fallthrough
CT: control target
= control target key end

     0   :  { %vm184_vm0 = vcmask 130048   ;;  %s1515_s0 = inlined_call_operand.vmem [shape: f32[128,16], index: 0, kind: input, shape index: {}]   ;;  %s1516_s1 = inlined_call_operand.vmem [shape: f32[1,16], index: 1, kind: input, shape index: {}]   ;;  %s1517_s2 = inlined_call_operand.vmem [shape: f32[1,16], index: 2, kind: input, shape index: {}]   ;;  %s1518_s3 = inlined_call_operand.vmem [shape: f32[16,32], index: 3, kind: input, shape index: {}]   ;;  %s1519_s4 = inlined_call_operand.vmem [shape: f32[1,32], index: 4, kind: input, shape index: {}]   ;;  %s1520_s5 = inlined_call_operand.vmem [shape: f32[16,32], index: 5, kind: input, shape index: {}]   ;;  %s1521_s6 = inlined_call_operand.vmem [shape: f32[16,128], index: 6, kind: input, shape index: {}]   ;;  %s1522_s7 = inlined_call_operand.vmem [shape: f32[128,32], index: 7, kind: output, shape index: {0}]   ;;  %s1523_s8 = inlined_call_operand.vmem [shape: f32[128,32], index: 8, kind: output, shape index: {1}]   ;;  %s1524_s9 = inlined_call_operand.hbm [shape: bf16[128,128], index: 9, kind: output, shape index: {2}]  }
   0x1   :  { %v176_v0 = vld [vmem:[%s1518_s3 + $0x8] sm:$0xff]  ;;  %v175_v1 = vld [vmem:[%s1518_s3] sm:$0xff]  ;;  %v32_v14 = vld [vmem:[%s1515_s0 + $0x10] sm:$0xff] }
   0x2   :  { %v30_v2 = vld [vmem:[%s1515_s0] sm:$0xff]  ;;  %1042 = vmatprep.subr.mxu0 %v176_v0  ;;  %1126 = vmatprep.subr.mxu1 %v176_v0  ;;  %v558_v5 = vld [vmem:[%s1521_s6 + $0x8] sm:$0xff]  ;;  %v33_v15 = vld [vmem:[%s1515_s0 + $0x18] sm:$0xff] }
   0x3   :  { %v1222_v3 = vld [vmem:[%s1516_s1] ss:$0 sm:$0xff]  ;;  %1043 = vmatpush3.msra.mxu0 %v176_v0  ;;  %1128 = vmatpush3.msra.mxu1 %v176_v0  ;;  %v31_v7 = vld [vmem:[%s1515_s0 + $0x8] sm:$0xff]  ;;  %v40_v19 = vld [vmem:[%s1515_s0 + $0x50] sm:$0xff] }
   0x4   :  { %v1227_v4 = vld [vmem:[%s1517_s2] ss:$0 sm:$0xff]  ;;  %v53_v6 = vmul.f32 %v1222_v3, %v30_v2  ;;  %v39_v9 = vld [vmem:[%s1515_s0 + $0x48] sm:$0xff]  ;;  %1044 = vmatprep.subr.mxu0 %v175_v1  ;;  %1127 = vmatprep.subr.mxu1 %v175_v1  ;;  %v54_v10 = vmul.f32 %v1222_v3, %v31_v7  ;;  %v55_v17 = vmul.f32 %v1222_v3, %v32_v14  ;;  %v41_v20 = vld [vmem:[%s1515_s0 + $0x58] sm:$0xff] }
   0x5   :  { %v38_v8 = vld [vmem:[%s1515_s0 + $0x40] sm:$0xff]  ;;  %v62_v12 = vmul.f32 %v1222_v3, %v39_v9  ;;  %v395_v13 = vld [vmem:[%s1520_s5 + $0x8] sm:$0xff]  ;;  %1045 = vmatpush3.msra.mxu0 %v175_v1  ;;  %1129 = vmatpush3.msra.mxu1 %v175_v1  ;;  %v56_v18 = vmul.f32 %v1222_v3, %v33_v15  ;;  %v63_v29 = vmul.f32 %v1222_v3, %v40_v19  ;;  %v36_v37 = vld [vmem:[%s1515_s0 + $0x30] sm:$0xff] }
   0x6   :  { %v61_v11 = vmul.f32 %v1222_v3, %v38_v8  ;;  %v1255_v16 = vadd.f32 %v1227_v4, %v53_v6  ;;  %v34_v21 = vld [vmem:[%s1515_s0 + $0x20] sm:$0xff]  ;;  %1098 = vmatprep.subr.mxu0 %v558_v5  ;;  %v77_v22 = vadd.f32 %v1227_v4, %v54_v10  ;;  %1070 = vmatprep.subr.mxu1 %v395_v13  ;;  %v35_v25 = vld [vmem:[%s1515_s0 + $0x28] sm:$0xff]  ;;  %v37_v41 = vld [vmem:[%s1515_s0 + $0x38] sm:$0xff] }
   0x7   :  { %v1273_v24 = vadd.f32 %v1227_v4, %v62_v12  ;;  %v42_v26 = vld [vmem:[%s1515_s0 + $0x60] sm:$0xff]  ;;  %v78_v27 = vadd.f32 %v1227_v4, %v55_v17  ;;  %v79_v28 = vadd.f32 %v1227_v4, %v56_v18  ;;  %v64_v30 = vmul.f32 %v1222_v3, %v41_v20  ;;  %v43_v31 = vld [vmem:[%s1515_s0 + $0x68] sm:$0xff]  ;;  %v44_v42 = vld [vmem:[%s1515_s0 + $0x70] sm:$0xff] }
   0x8   :  { %v1270_v23 = vadd.f32 %v1227_v4, %v61_v11  ;;  %1046 = vmatprep.mubr.msk.f32.mxu0 %vm184_vm0, %v1255_v16  ;;  %v57_v32 = vmul.f32 %v1222_v3, %v34_v21  ;;  %v557_v33 = vld [vmem:[%s1521_s6] sm:$0xff]  ;;  %v58_v34 = vmul.f32 %v1222_v3, %v35_v25  ;;  %v65_v35 = vmul.f32 %v1222_v3, %v42_v26 }
   0x9   :  { %1047 = vmatmul.mubr.msk.f32.vlgmr.msra.gmra.mxu0 %vm184_vm0, %v77_v22  ;;  %v394_v36 = vld [vmem:[%s1520_s5] sm:$0xff]  ;;  %v86_v38 = vadd.f32 %v1227_v4, %v63_v29  ;;  %v87_v39 = vadd.f32 %v1227_v4, %v64_v30  ;;  %v66_v40 = vmul.f32 %v1222_v3, %v43_v31 }
   0xa   :  { %1058 = vmatprep.mubr.msk.f32.mxu1 %vm184_vm0, %v1270_v23  ;;  %1099 = vmatpush3.msra.mxu0 %v558_v5 }
   0xb   :  { %1059 = vmatmul.mubr.msk.f32.vlgmr.msra.gmra.mxu1 %vm184_vm0, %v1273_v24 }
   0xc   :  { %15 = vsyncpa [#allocation3], 0  ;;  %1049 = vmatprep.mubr.msk.f32.mxu0 %vm184_vm0, %v78_v27  ;;  %1071 = vmatpush3.msra.mxu1 %v395_v13  ;;  %v80_v43 = vadd.f32 %v1227_v4, %v57_v32  ;;  %v88_v44 = vadd.f32 %v1227_v4, %v65_v35  ;;  %v45_v45 = vld [vmem:[%s1515_s0 + $0x78] sm:$0xff]  ;;  %v59_v46 = vmul.f32 %v1222_v3, %v36_v37  ;;  %v92_v56 = vlaneseq  ;;  %v860_v57 = vld [vmem:[%s1519_s4] ss:$0 sm:$0xff]  ;;  %s1157_s30 = smov [#allocation2]  }
   0xd   :  { %1061 = vmatprep.mubr.msk.f32.mxu1 %vm184_vm0, %v86_v38  ;;  %1100 = vmatprep.subr.mxu0 %v557_v33  ;;  %v81_v47 = vadd.f32 %v1227_v4, %v58_v34  ;;  %v60_v48 = vmul.f32 %v1222_v3, %v37_v41  ;;  %v67_v49 = vmul.f32 %v1222_v3, %v44_v42  ;;  %vm720_vm1 = vcmask 261120   ;;  %s842_s10 = sshll.u32 %s1157_s30, 4  ;;  %s843_s10 = int_to_ptr.vmem [resolvable:$true] %s842_s10 }
   0xe   :  { %1050 = vmatmul.mubr.msk.f32.gmra.mxu0 %vm184_vm0, %v79_v28  ;;  %1072 = vmatprep.subr.mxu1 %v394_v36  ;;  %v89_v50 = vadd.f32 %v1227_v4, %v66_v40  ;;  %v82_v51 = vadd.f32 %v1227_v4, %v59_v46  ;;  %v68_v52 = vmul.f32 %v1222_v3, %v45_v45  ;;  %v93_v61 = vshrl.u32 %v92_v56, 7  ;;  %s1134_s16 = scalar_lea.vmem %s843_s10, 1024  ;;  %p1139_p1 = scmp.lt.s32.totalorder %s843_s10, %s843_s10 }
   0xf   :  { %1062 = vmatmul.mubr.msk.f32.gmra.mxu1 %vm184_vm0, %v87_v39  ;;  %1052 = vmatprep.mubr.msk.f32.mxu0 %vm184_vm0, %v80_v43  ;;  %v90_v53 = vadd.f32 %v1227_v4, %v67_v49  ;;  %v83_v54 = vadd.f32 %v1227_v4, %v60_v48  ;;  %v1156_v25 = vmov 0.0   ;;  %p1135_p0 = scmp.ne.s32.totalorder %s843_s10, %s1134_s16  ;;  %p1140_p2 = scmp.lt.s32.totalorder %s1134_s16, %s1134_s16 }
  0x10   :  { %1064 = vmatprep.mubr.msk.f32.mxu1 %vm184_vm0, %v88_v44  ;;  %1101 = vmatpush3.msra.mxu0 %v557_v33  ;;  %v91_v55 = vadd.f32 %v1227_v4, %v68_v52  ;;  %v100_v7 = vadd.s32 56, %v93_v61 }
  0x11   :  { %1073 = vmatpush3.msra.mxu1 %v394_v36  ;;  %p1141_p3 = por %p1140_p2, %p1139_p1 }
  0x12   :  { %1053 = vmatmul.mubr.msk.f32.gmra.mxu0 %vm184_vm0, %v81_v47  ;;  %vm134_vm2 = vcmp.lt.s32.totalorder %v100_v7, 60 }
  0x13   :  { %1065 = vmatmul.mubr.msk.f32.gmra.mxu1 %vm184_vm0, %v89_v50  ;;  %1055 = vmatprep.mubr.msk.f32.mxu0 %vm184_vm0, %v82_v51  ;;  %v859_v26 = vsel %vm134_vm2, 1.0, %v1156_v25  ;;  %p1142_p4 = pnand %p1141_p3, %p1135_p0 }
  0x14   :  { %1067 = vmatprep.mubr.msk.f32.mxu1 %vm184_vm0, %v90_v53 }
  0x16   :  { %1056 = vmatmul.mubr.msk.f32.gmra.mxu0 %vm184_vm0, %v83_v54 }
  0x17   :  { %1068 = vmatmul.mubr.msk.f32.gmra.mxu1 %vm184_vm0, %v91_v55  ;;  %1102 = vmatprep.mubr.msk.f32.mxu0 %vm184_vm0, %v1255_v16 }
  0x18   :  { %1074 = vmatprep.mubr.msk.f32.mxu1 %vm184_vm0, %v1255_v16 }
  0x1a   :  { %1103 = vmatmul.mubr.msk.f32.vlgmr.msra.gmra.mxu0 %vm184_vm0, %v77_v22 }
  0x1b   :  { %1075 = vmatmul.mubr.msk.f32.vlgmr.msra.gmra.mxu1 %vm184_vm0, %v77_v22  ;;  %1105 = vmatprep.mubr.msk.f32.mxu0 %vm184_vm0, %v78_v27 }
  0x1c   :  { %1077 = vmatprep.mubr.msk.f32.mxu1 %vm184_vm0, %v78_v27 }
  0x1e   :  { %1106 = vmatmul.mubr.msk.f32.gmra.mxu0 %vm184_vm0, %v79_v28 }
  0x1f   :  { %1078 = vmatmul.mubr.msk.f32.gmra.mxu1 %vm184_vm0, %v79_v28  ;;  %1108 = vmatprep.mubr.msk.f32.mxu0 %vm184_vm0, %v80_v43 }
  0x20   :  { %1080 = vmatprep.mubr.msk.f32.mxu1 %vm184_vm0, %v80_v43 }
  0x22   :  { %1109 = vmatmul.mubr.msk.f32.gmra.mxu0 %vm184_vm0, %v81_v47 }
  0x23   :  { %1081 = vmatmul.mubr.msk.f32.gmra.mxu1 %vm184_vm0, %v81_v47  ;;  %1111 = vmatprep.mubr.msk.f32.mxu0 %vm184_vm0, %v82_v51 }
  0x24   :  { %1083 = vmatprep.mubr.msk.f32.mxu1 %vm184_vm0, %v82_v51 }
  0x26   :  { %1112 = vmatmul.mubr.msk.f32.gmra.mxu0 %vm184_vm0, %v83_v54 }
  0x27   :  { %1084 = vmatmul.mubr.msk.f32.gmra.mxu1 %vm184_vm0, %v83_v54  ;;  %1114 = vmatprep.mubr.msk.f32.mxu0 %vm184_vm0, %v1270_v23 }
  0x28   :  { %1086 = vmatprep.mubr.msk.f32.mxu1 %vm184_vm0, %v1270_v23 }
  0x2a   :  { %1115 = vmatmul.mubr.msk.f32.gmra.mxu0 %vm184_vm0, %v1273_v24 }
  0x2b   :  { %1087 = vmatmul.mubr.msk.f32.gmra.mxu1 %vm184_vm0, %v1273_v24  ;;  %1117 = vmatprep.mubr.msk.f32.mxu0 %vm184_vm0, %v86_v38 }
  0x2c   :  { %1089 = vmatprep.mubr.msk.f32.mxu1 %vm184_vm0, %v86_v38 }
  0x2e   :  { %1118 = vmatmul.mubr.msk.f32.gmra.mxu0 %vm184_vm0, %v87_v39 }
  0x2f   :  { %1090 = vmatmul.mubr.msk.f32.gmra.mxu1 %vm184_vm0, %v87_v39  ;;  %1120 = vmatprep.mubr.msk.f32.mxu0 %vm184_vm0, %v88_v44 }
  0x30   :  { %1092 = vmatprep.mubr.msk.f32.mxu1 %vm184_vm0, %v88_v44 }
  0x32   :  { %1121 = vmatmul.mubr.msk.f32.gmra.mxu0 %vm184_vm0, %v89_v50 }
  0x33   :  { %1093 = vmatmul.mubr.msk.f32.gmra.mxu1 %vm184_vm0, %v89_v50  ;;  %1123 = vmatprep.mubr.msk.f32.mxu0 %vm184_vm0, %v90_v53 }
  0x34   :  { %1095 = vmatprep.mubr.msk.f32.mxu1 %vm184_vm0, %v90_v53 }
  0x36   :  { %1124 = vmatmul.mubr.msk.f32.gmra.mxu0 %vm184_vm0, %v91_v55 }
  0x37   :  { %1096 = vmatmul.mubr.msk.f32.gmra.mxu1 %vm184_vm0, %v91_v55 }
  0xc9   :  { %v1048_v58 = vpop.f32.mrf.mxu0 }
  0xca   :  { %v305_v59 = vadd.f32 %v1048_v58, %v860_v57 }
  0xcb   :  { %v1060_v60 = vpop.f32.mrf.mxu1  ;;  %v299_v63 = vpop.f32.mrf.mxu0 }
  0xcc   :  { %v345_v62 = vadd.f32 %v1060_v60, %v860_v57  ;;  %722 = vst.msk [vmem:[%s1522_s7 + $0x8] sm:$0xff] %vm720_vm1, %v305_v59  ;;  %v300_v0 = vadd.f32 %v860_v57, %v299_v63 }
  0xcd   :  { %v339_v1 = vpop.f32.mrf.mxu1 }
  0xce   :  { %v387_v2 = vmul.f32 0.0, %v345_v62  ;;  %v340_v3 = vadd.f32 %v860_v57, %v339_v1  ;;  %v1051_v4 = vpop.f32.mrf.mxu0  ;;  %721 = vst.msk [vmem:[%s1522_s7] sm:$0xff] %vm720_vm1, %v300_v0 }
  0xcf   :  { %v315_v5 = vadd.f32 %v1051_v4, %v860_v57  ;;  %v1063_v6 = vpop.f32.mrf.mxu1 }
  0xd0   :  { %730 = vst.msk [vmem:[%s1522_s7 + $0x48] sm:$0xff] %vm720_vm1, %v387_v2  ;;  %v386_v8 = vmul.f32 0.0, %v340_v3  ;;  %v355_v9 = vadd.f32 %v1063_v6, %v860_v57  ;;  %v309_v10 = vpop.f32.mrf.mxu0 }
  0xd1   :  { %724 = vst.msk [vmem:[%s1522_s7 + $0x18] sm:$0xff] %vm720_vm1, %v315_v5  ;;  %v310_v11 = vadd.f32 %v860_v57, %v309_v10  ;;  %v349_v12 = vpop.f32.mrf.mxu1 }
  0xd2   :  { %729 = vst.msk [vmem:[%s1522_s7 + $0x40] sm:$0xff] %vm720_vm1, %v386_v8  ;;  %v389_v13 = vmul.f32 0.0, %v355_v9  ;;  %v350_v14 = vadd.f32 %v860_v57, %v349_v12  ;;  %v1054_v15 = vpop.f32.mrf.mxu0 }
  0xd3   :  { %723 = vst.msk [vmem:[%s1522_s7 + $0x10] sm:$0xff] %vm720_vm1, %v310_v11  ;;  %v325_v16 = vadd.f32 %v1054_v15, %v860_v57  ;;  %v1066_v17 = vpop.f32.mrf.mxu1 }
  0xd4   :  { %732 = vst.msk [vmem:[%s1522_s7 + $0x58] sm:$0xff] %vm720_vm1, %v389_v13  ;;  %v388_v18 = vmul.f32 0.0, %v350_v14  ;;  %v365_v19 = vadd.f32 %v1066_v17, %v860_v57  ;;  %v319_v20 = vpop.f32.mrf.mxu0 }
  0xd5   :  { %726 = vst.msk [vmem:[%s1522_s7 + $0x28] sm:$0xff] %vm720_vm1, %v325_v16  ;;  %v320_v21 = vadd.f32 %v860_v57, %v319_v20  ;;  %v359_v22 = vpop.f32.mrf.mxu1 }
  0xd6   :  { %731 = vst.msk [vmem:[%s1522_s7 + $0x50] sm:$0xff] %vm720_vm1, %v388_v18  ;;  %v391_v23 = vmul.f32 0.0, %v365_v19  ;;  %v360_v24 = vadd.f32 %v860_v57, %v359_v22  ;;  %v1057_v27 = vpop.f32.mrf.mxu0 }
  0xd7   :  { %725 = vst.msk [vmem:[%s1522_s7 + $0x20] sm:$0xff] %vm720_vm1, %v320_v21  ;;  %v335_v28 = vadd.f32 %v1057_v27, %v860_v57  ;;  %v1069_v29 = vpop.f32.mrf.mxu1 }
  0xd8   :  { %734 = vst.msk [vmem:[%s1522_s7 + $0x68] sm:$0xff] %vm720_vm1, %v391_v23  ;;  %v390_v30 = vmul.f32 0.0, %v360_v24  ;;  %v375_v31 = vadd.f32 %v1069_v29, %v860_v57  ;;  %v329_v32 = vpop.f32.mrf.mxu0 }
  0xd9   :  { %v385_v33 = vmul.f32 %v859_v26, %v335_v28  ;;  %v330_v34 = vadd.f32 %v860_v57, %v329_v32  ;;  %v369_v35 = vpop.f32.mrf.mxu1 }
  0xda   :  { %733 = vst.msk [vmem:[%s1522_s7 + $0x60] sm:$0xff] %vm720_vm1, %v390_v30  ;;  %v393_v36 = vmul.f32 0.0, %v375_v31  ;;  %v370_v37 = vadd.f32 %v860_v57, %v369_v35  ;;  %v1104_v38 = vpop.f32.mrf.mxu0 }
  0xdb   :  { %728 = vst.msk [vmem:[%s1522_s7 + $0x38] sm:$0xff] %vm720_vm1, %v385_v33  ;;  %727 = vst.msk [vmem:[%s1522_s7 + $0x30] sm:$0xff] %vm720_vm1, %v330_v34  ;;  %v1076_v39 = vpop.f32.mrf.mxu1 }
  0xdc   :  { %736 = vst.msk [vmem:[%s1522_s7 + $0x78] sm:$0xff] %vm720_vm1, %v393_v36  ;;  %v392_v40 = vmul.f32 0.0, %v370_v37  ;;  %738 = vst.msk [vmem:[%s1523_s8 + $0x8] sm:$0xff] %vm720_vm1, %v1076_v39  ;;  %v625_v41 = vpop.f32.mrf.mxu0 }
  0xdd   :  { %v944_v42 = vpack.c.bf16 %v1104_v38, %v625_v41  ;;  %v462_v43 = vpop.f32.mrf.mxu1 }
  0xde   :  { %735 = vst.msk [vmem:[%s1522_s7 + $0x70] sm:$0xff] %vm720_vm1, %v392_v40  ;;  %737 = vst.msk [vmem:[%s1523_s8] sm:$0xff] %vm720_vm1, %v462_v43  ;;  %v1107_v44 = vpop.f32.mrf.mxu0 }
  0xdf   :  { %945 = vst [vmem:[#allocation2] sm:$0xff] %v944_v42   ;;  %v1079_v45 = vpop.f32.mrf.mxu1 }
  0xe0   :  { %740 = vst.msk [vmem:[%s1523_s8 + $0x18] sm:$0xff] %vm720_vm1, %v1079_v45  ;;  %v635_v46 = vpop.f32.mrf.mxu0 }
  0xe1   :  { %v949_v47 = vpack.c.bf16 %v1107_v44, %v635_v46  ;;  %v472_v48 = vpop.f32.mrf.mxu1 }
  0xe2   :  { %739 = vst.msk [vmem:[%s1523_s8 + $0x10] sm:$0xff] %vm720_vm1, %v472_v48  ;;  %v1110_v49 = vpop.f32.mrf.mxu0 }
  0xe3   :  { %981 = vst [vmem:[#allocation2 + $0x8] sm:$0xff] %v949_v47   ;;  %v1082_v50 = vpop.f32.mrf.mxu1 }
  0xe4   :  { %742 = vst.msk [vmem:[%s1523_s8 + $0x28] sm:$0xff] %vm720_vm1, %v1082_v50  ;;  %v645_v51 = vpop.f32.mrf.mxu0 }
  0xe5   :  { %v954_v52 = vpack.c.bf16 %v1110_v49, %v645_v51  ;;  %v482_v53 = vpop.f32.mrf.mxu1 }
  0xe6   :  { %741 = vst.msk [vmem:[%s1523_s8 + $0x20] sm:$0xff] %vm720_vm1, %v482_v53  ;;  %v1113_v54 = vpop.f32.mrf.mxu0 }
  0xe7   :  { %982 = vst [vmem:[#allocation2 + $0x10] sm:$0xff] %v954_v52   ;;  %v711_v55 = vmul.f32 %v1113_v54, %v859_v26  ;;  %v1085_v56 = vpop.f32.mrf.mxu1 }
  0xe8   :  { %v548_v57 = vmul.f32 %v1085_v56, %v859_v26  ;;  %v655_v58 = vpop.f32.mrf.mxu0 }
  0xe9   :  { %v959_v59 = vpack.c.bf16 %v711_v55, %v655_v58  ;;  %v492_v60 = vpop.f32.mrf.mxu1 }
  0xea   :  { %744 = vst.msk [vmem:[%s1523_s8 + $0x38] sm:$0xff] %vm720_vm1, %v548_v57  ;;  %743 = vst.msk [vmem:[%s1523_s8 + $0x30] sm:$0xff] %vm720_vm1, %v492_v60  ;;  %v1116_v61 = vpop.f32.mrf.mxu0 }
  0xeb   :  { %983 = vst [vmem:[#allocation2 + $0x18] sm:$0xff] %v959_v59   ;;  %v1088_v62 = vpop.f32.mrf.mxu1  ;;  %v713_v1 = vmul.f32 0.0, %v1116_v61 }
  0xec   :  { %v550_v63 = vmul.f32 0.0, %v1088_v62  ;;  %v665_v0 = vpop.f32.mrf.mxu0 }
  0xed   :  { %v712_v2 = vmul.f32 0.0, %v665_v0  ;;  %v502_v3 = vpop.f32.mrf.mxu1 }
  0xee   :  { %746 = vst.msk [vmem:[%s1523_s8 + $0x48] sm:$0xff] %vm720_vm1, %v550_v63  ;;  %v549_v4 = vmul.f32 0.0, %v502_v3  ;;  %v1119_v5 = vpop.f32.mrf.mxu0 }
  0xef   :  { %v964_v6 = vpack.c.bf16 %v713_v1, %v712_v2  ;;  %v1091_v7 = vpop.f32.mrf.mxu1  ;;  %v715_v10 = vmul.f32 0.0, %v1119_v5 }
  0xf0   :  { %745 = vst.msk [vmem:[%s1523_s8 + $0x40] sm:$0xff] %vm720_vm1, %v549_v4  ;;  %v552_v8 = vmul.f32 0.0, %v1091_v7  ;;  %v675_v9 = vpop.f32.mrf.mxu0 }
  0xf1   :  { %984 = vst [vmem:[#allocation2 + $0x20] sm:$0xff] %v964_v6   ;;  %v714_v11 = vmul.f32 0.0, %v675_v9  ;;  %v512_v12 = vpop.f32.mrf.mxu1 }
  0xf2   :  { %748 = vst.msk [vmem:[%s1523_s8 + $0x58] sm:$0xff] %vm720_vm1, %v552_v8  ;;  %v551_v13 = vmul.f32 0.0, %v512_v12  ;;  %v1122_v14 = vpop.f32.mrf.mxu0 }
  0xf3   :  { %v969_v15 = vpack.c.bf16 %v715_v10, %v714_v11  ;;  %v1094_v16 = vpop.f32.mrf.mxu1  ;;  %v717_v19 = vmul.f32 0.0, %v1122_v14 }
  0xf4   :  { %747 = vst.msk [vmem:[%s1523_s8 + $0x50] sm:$0xff] %vm720_vm1, %v551_v13  ;;  %v554_v17 = vmul.f32 0.0, %v1094_v16  ;;  %v685_v18 = vpop.f32.mrf.mxu0 }
  0xf5   :  { %985 = vst [vmem:[#allocation2 + $0x28] sm:$0xff] %v969_v15   ;;  %v716_v20 = vmul.f32 0.0, %v685_v18  ;;  %v522_v21 = vpop.f32.mrf.mxu1 }
  0xf6   :  { %750 = vst.msk [vmem:[%s1523_s8 + $0x68] sm:$0xff] %vm720_vm1, %v554_v17  ;;  %v553_v22 = vmul.f32 0.0, %v522_v21  ;;  %v1125_v23 = vpop.f32.mrf.mxu0 }
  0xf7   :  { %v974_v24 = vpack.c.bf16 %v717_v19, %v716_v20  ;;  %v1097_v25 = vpop.f32.mrf.mxu1  ;;  %v719_v28 = vmul.f32 0.0, %v1125_v23 }
  0xf8   :  { %749 = vst.msk [vmem:[%s1523_s8 + $0x60] sm:$0xff] %vm720_vm1, %v553_v22  ;;  %v556_v26 = vmul.f32 0.0, %v1097_v25  ;;  %v695_v27 = vpop.f32.mrf.mxu0 }
  0xf9   :  { %986 = vst [vmem:[#allocation2 + $0x30] sm:$0xff] %v974_v24   ;;  %v718_v29 = vmul.f32 0.0, %v695_v27  ;;  %v532_v30 = vpop.f32.mrf.mxu1 }
  0xfa   :  { %752 = vst.msk [vmem:[%s1523_s8 + $0x78] sm:$0xff] %vm720_vm1, %v556_v26  ;;  %v555_v31 = vmul.f32 0.0, %v532_v30 }
  0xfb   :  { %v979_v32 = vpack.c.bf16 %v719_v28, %v718_v29 }
  0xfc   :  { %751 = vst.msk [vmem:[%s1523_s8 + $0x70] sm:$0xff] %vm720_vm1, %v555_v31 }
  0xfd   :  { %987 = vst [vmem:[#allocation2 + $0x38] sm:$0xff] %v979_v32  }
  0xfe   :  { %1145 = shalt.err (!%p1142_p4)
}
  0xff   :  { %s1158_s17 = smov 64   ;;  %s1159_s18 = smov 4  }
 0x100   :  { %848 = dma.vmem_to_hbm [thread:$0]  %s843_s10, 1024, %s1524_s9, [#allocation3], %s1158_s17, %s1158_s17, %s1159_s18  }
 0x101   :  { %1154 = dma.done.wait [#allocation3], 1024  }
 0x102   :  { %1155 = vsyncadd [#allocation3], 4294966272 }
 0x103   :  { %856 = vsyncpa [#allocation3], 1 }

</bundles_post_ra>
